<compile_context>
chip_gen: v5e
topology: v5e:2x2
jax: 0.10.0
libtpu: 0.0.40
codegen_flags: <defaults>
</compile_context>

<pallas_src>
import jax
import jax.numpy as jnp
from jax.experimental import pallas as pl
from jax.experimental.pallas import tpu as pltpu

H1 = 50      # fc1 out_features
H2 = 30      # fc2 out_features
LANES = 128  # TPU lane width; hidden dims zero-padded to this


def _round_up(n, m):
    return ((n + m - 1) // m) * m


def _mlp_kernel(x_ref, w1_ref, b1_ref, w2_ref, b2_ref, w3_ref, b3_ref, o_ref):
    x = x_ref[...]                                                      # (TB, D) bf16
    # fc1 + ReLU: bf16 MXU inputs, f32 accumulate, f32 element-wise.
    h1 = jnp.dot(x, w1_ref[...], preferred_element_type=jnp.float32)   # (TB, 128)
    h1 = jnp.maximum(h1 + b1_ref[...], 0.0)
    # fc2 + ReLU.
    h2 = jnp.dot(h1.astype(jnp.bfloat16), w2_ref[...],
                 preferred_element_type=jnp.float32)                   # (TB, 128)
    h2 = jnp.maximum(h2 + b2_ref[...], 0.0)
    # Dropout(p=0.2): identity in eval/inference mode.
    # TODO(synk): training-mode dropout (pltpu.prng_* stochastic masking) not emitted.
    # fc3 (N=1): lane reduce on VPU/XLU; padded lanes of h2/w3 are zero.
    h3 = jnp.sum(h2 * w3_ref[...], axis=-1, keepdims=True) + b3_ref[0]  # (TB, 1)
    o_ref[...] = jnp.maximum(h3, 0.0).astype(o_ref.dtype)


def prepare_params(params):
    """One-time param prep (NOT per forward call): transpose PyTorch (out,in)
    weights to (in,out), zero-pad hidden dims to 128 lanes, cast matmul
    weights to bf16, keep biases / fc3 row in f32."""
    d = params["fc1_w"].shape[1]
    w1 = jnp.zeros((d, LANES), jnp.bfloat16).at[:, :H1].set(
        params["fc1_w"].T.astype(jnp.bfloat16))
    b1 = jnp.zeros((1, LANES), jnp.float32).at[0, :H1].set(
        params["fc1_b"].astype(jnp.float32))
    w2 = jnp.zeros((LANES, LANES), jnp.bfloat16).at[:H1, :H2].set(
        params["fc2_w"].T.astype(jnp.bfloat16))
    b2 = jnp.zeros((1, LANES), jnp.float32).at[0, :H2].set(
        params["fc2_b"].astype(jnp.float32))
    w3 = jnp.zeros((1, LANES), jnp.float32).at[0, :H2].set(
        params["fc3_w"][0].astype(jnp.float32))
    b3 = params["fc3_b"].astype(jnp.float32).reshape((1,))
    return (w1, b1, w2, b2, w3, b3)


def regressor_forward(x, kparams, *, tile_b_max=4096):
    """x: (B, D) float32. kparams: output of prepare_params."""
    w1, b1, w2, b2, w3, b3 = kparams
    b, d = x.shape

    # Large batch tiles (bf16 x tile is tiny: tile_b*D*2 B) amortize the
    # ~0.35us per-grid-step overhead; small B collapses to a single tile.
    tile_b = tile_b_max if b >= tile_b_max else _round_up(max(b, 8), 8)
    b_pad = _round_up(b, tile_b)

    xb = x.astype(jnp.bfloat16)          # halves the dominant HBM read
    if b_pad != b:
        xb = jnp.pad(xb, ((0, b_pad - b), (0, 0)))

    weight_bytes = (w1.size + w2.size) * 2 + (b1.size + b2.size + w3.size + b3.size) * 4
    cost = pl.CostEstimate(
        flops=2 * b_pad * (d * H1 + H1 * H2 + H2),
        transcendentals=0,
        bytes_accessed=b_pad * (d * 2 + 4) + weight_bytes,
    )

    out = pl.pallas_call(
        _mlp_kernel,
        out_shape=jax.ShapeDtypeStruct((b_pad, 1), jnp.float32),
        grid=(b_pad // tile_b,),
        in_specs=[
            pl.BlockSpec((tile_b, d), lambda i: (i, 0)),        # x: batch-tiled
            pl.BlockSpec((d, LANES), lambda i: (0, 0)),         # W1 (VMEM-resident)
            pl.BlockSpec((1, LANES), lambda i: (0, 0)),         # b1
            pl.BlockSpec((LANES, LANES), lambda i: (0, 0)),     # W2
            pl.BlockSpec((1, LANES), lambda i: (0, 0)),         # b2
            pl.BlockSpec((1, LANES), lambda i: (0, 0)),         # W3 row
            pl.BlockSpec(memory_space=pltpu.MemorySpace.SMEM),  # b3 scalar
        ],
        out_specs=pl.BlockSpec((tile_b, 1), lambda i: (i, 0)),
        compiler_params=pltpu.CompilerParams(
            dimension_semantics=("parallel",),     # shard batch tiles across TCs (v7x)
            vmem_limit_bytes=48 * 1024 * 1024,     # headroom under v7x's 64 MiB
        ),
        cost_estimate=cost,
    )(xb, w1, b1, w2, b2, w3, b3)
    return out[:b]


def init_params(key, input_dim):
    """Deterministic init mimicking nn.Linear default (uniform +- 1/sqrt(fan_in))."""
    ks = jax.random.split(key, 6)

    def lin(kw, kb, fan_in, fan_out):
        bound = 1.0 / jnp.sqrt(jnp.float32(fan_in))
        w = jax.random.uniform(kw, (fan_out, fan_in), jnp.float32, -bound, bound)
        bias = jax.random.uniform(kb, (fan_out,), jnp.float32, -bound, bound)
        return w, bias

    w1, b1 = lin(ks[0], ks[1], input_dim, H1)
    w2, b2 = lin(ks[2], ks[3], H1, H2)
    w3, b3 = lin(ks[4], ks[5], H2, 1)
    return {"fc1_w": w1, "fc1_b": b1,
            "fc2_w": w2, "fc2_b": b2,
            "fc3_w": w3, "fc3_b": b3}


def _reference(x, p):
    """Pure-JAX reference with matching bf16 matmul inputs / f32 accumulation."""
    h1 = jnp.dot(x.astype(jnp.bfloat16), p["fc1_w"].T.astype(jnp.bfloat16),
                 preferred_element_type=jnp.float32) + p["fc1_b"]
    h1 = jnp.maximum(h1, 0.0)
    h2 = jnp.dot(h1.astype(jnp.bfloat16), p["fc2_w"].T.astype(jnp.bfloat16),
                 preferred_element_type=jnp.float32) + p["fc2_b"]
    h2 = jnp.maximum(h2, 0.0)
    h3 = jnp.maximum(h2 @ p["fc3_w"].T + p["fc3_b"], 0.0)
    return h3


if __name__ == "__main__":
    key = jax.random.PRNGKey(0)
    k_x, k_p, k_x2 = jax.random.split(key, 3)

    batch, input_dim = 8, 32
    x = jax.random.normal(k_x, (batch, input_dim), jnp.float32)
    params = init_params(k_p, input_dim)
    kparams = prepare_params(params)

    out = jax.block_until_ready(regressor_forward(x, kparams))
    ref = _reference(x, params)
    assert out.shape == (batch, 1), out.shape
    assert jnp.allclose(out, ref, atol=2e-2, rtol=2e-2), \
        f"mismatch vs reference: max abs diff {jnp.max(jnp.abs(out - ref))}"

    # Exercise the multi-tile grid + batch-padding path (B not a tile multiple).
    x2 = jax.random.normal(k_x2, (300, input_dim), jnp.float32)
    out2 = jax.block_until_ready(regressor_forward(x2, kparams, tile_b_max=128))
    ref2 = _reference(x2, params)
    assert out2.shape == (300, 1), out2.shape
    assert jnp.allclose(out2, ref2, atol=2e-2, rtol=2e-2), \
        f"tiled mismatch vs reference: max abs diff {jnp.max(jnp.abs(out2 - ref2))}"

    print("KERNEL_OK")
</pallas_src>

<mosaic_0001>
module attributes {stable_mosaic.version = 11 : i64} {
  func.func @_mlp_kernel(%arg0: i32, %arg1: memref<8x32xbf16, #tpu.memory_space<vmem>>, %arg2: memref<32x128xbf16, #tpu.memory_space<vmem>>, %arg3: memref<1x128xf32, #tpu.memory_space<vmem>>, %arg4: memref<128x128xbf16, #tpu.memory_space<vmem>>, %arg5: memref<1x128xf32, #tpu.memory_space<vmem>>, %arg6: memref<1x128xf32, #tpu.memory_space<vmem>>, %arg7: memref<1xf32, #tpu.memory_space<smem>>, %arg8: memref<8x1xf32, #tpu.memory_space<vmem>>) attributes {dimension_semantics = [#tpu.dimension_semantics<parallel>], iteration_bounds = array<i64: 1>, scalar_prefetch = 0 : i64, scratch_operands = 0 : i64, tpu.core_type = #tpu.core_type<tc>, window_params = [{transform_indices = @transform_0, window_bounds = array<i64: 8, 32>}, {pipeline_mode = #tpu.pipeline_mode<synchronous>, transform_indices = @transform_1, window_bounds = array<i64: 32, 128>}, {pipeline_mode = #tpu.pipeline_mode<synchronous>, transform_indices = @transform_2, window_bounds = array<i64: 1, 128>}, {pipeline_mode = #tpu.pipeline_mode<synchronous>, transform_indices = @transform_3, window_bounds = array<i64: 128, 128>}, {pipeline_mode = #tpu.pipeline_mode<synchronous>, transform_indices = @transform_4, window_bounds = array<i64: 1, 128>}, {pipeline_mode = #tpu.pipeline_mode<synchronous>, transform_indices = @transform_5, window_bounds = array<i64: 1, 128>}, {transform_indices = @transform_6, window_bounds = array<i64: 1>}, {transform_indices = @transform_7, window_bounds = array<i64: 8, 1>}]} {
    %c0 = arith.constant 0 : index
    %c0_0 = arith.constant 0 : index
    %0 = vector.load %arg1[%c0, %c0_0] : memref<8x32xbf16, #tpu.memory_space<vmem>>, vector<8x32xbf16>
    %c0_1 = arith.constant 0 : index
    %c0_2 = arith.constant 0 : index
    %1 = vector.load %arg2[%c0_1, %c0_2] : memref<32x128xbf16, #tpu.memory_space<vmem>>, vector<32x128xbf16>
    %cst = arith.constant dense<0.000000e+00> : vector<8x128xf32>
    %2 = tpu.matmul %0, %1, %cst {dimension_numbers = #tpu.dot_dimension_numbers<[1], [0], [0], [1], [0, 0, 1, 1], [], []>} : vector<8x32xbf16>, vector<32x128xbf16>, vector<8x128xf32> -> vector<8x128xf32>
    %c0_3 = arith.constant 0 : index
    %c0_4 = arith.constant 0 : index
    %3 = vector.load %arg3[%c0_3, %c0_4] : memref<1x128xf32, #tpu.memory_space<vmem>>, vector<1x128xf32>
    %4 = vector.broadcast %3 : vector<1x128xf32> to vector<8x128xf32>
    %5 = arith.addf %2, %4 : vector<8x128xf32>
    %cst_5 = arith.constant 0.000000e+00 : f32
    %6 = vector.broadcast %cst_5 : f32 to vector<8x128xf32>
    %7 = arith.maximumf %5, %6 : vector<8x128xf32>
    %8 = arith.truncf %7 : vector<8x128xf32> to vector<8x128xbf16>
    %c0_6 = arith.constant 0 : index
    %c0_7 = arith.constant 0 : index
    %9 = vector.load %arg4[%c0_6, %c0_7] : memref<128x128xbf16, #tpu.memory_space<vmem>>, vector<128x128xbf16>
    %cst_8 = arith.constant dense<0.000000e+00> : vector<8x128xf32>
    %10 = tpu.matmul %8, %9, %cst_8 {dimension_numbers = #tpu.dot_dimension_numbers<[1], [0], [0], [1], [0, 0, 1, 1], [], []>} : vector<8x128xbf16>, vector<128x128xbf16>, vector<8x128xf32> -> vector<8x128xf32>
    %c0_9 = arith.constant 0 : index
    %c0_10 = arith.constant 0 : index
    %11 = vector.load %arg5[%c0_9, %c0_10] : memref<1x128xf32, #tpu.memory_space<vmem>>, vector<1x128xf32>
    %12 = vector.broadcast %11 : vector<1x128xf32> to vector<8x128xf32>
    %13 = arith.addf %10, %12 : vector<8x128xf32>
    %cst_11 = arith.constant 0.000000e+00 : f32
    %14 = vector.broadcast %cst_11 : f32 to vector<8x128xf32>
    %15 = arith.maximumf %13, %14 : vector<8x128xf32>
    %c0_12 = arith.constant 0 : index
    %c0_13 = arith.constant 0 : index
    %16 = vector.load %arg6[%c0_12, %c0_13] : memref<1x128xf32, #tpu.memory_space<vmem>>, vector<1x128xf32>
    %17 = vector.broadcast %16 : vector<1x128xf32> to vector<8x128xf32>
    %18 = arith.mulf %15, %17 : vector<8x128xf32>
    %cst_14 = arith.constant dense<0.000000e+00> : vector<8xf32>
    %19 = vector.multi_reduction <add>, %18, %cst_14 [1] : vector<8x128xf32> to vector<8xf32>
    %20 = vector.shape_cast %19 : vector<8xf32> to vector<8x1xf32>
    %c0_15 = arith.constant 0 : index
    %21 = memref.load %arg7[%c0_15] : memref<1xf32, #tpu.memory_space<smem>>
    %22 = vector.broadcast %21 : f32 to vector<8x1xf32>
    %23 = arith.addf %20, %22 : vector<8x1xf32>
    %cst_16 = arith.constant 0.000000e+00 : f32
    %24 = vector.broadcast %cst_16 : f32 to vector<8x1xf32>
    %25 = arith.maximumf %23, %24 : vector<8x1xf32>
    %c0_17 = arith.constant 0 : index
    %c0_18 = arith.constant 0 : index
    %26 = vector.load %arg8[%c0_17, %c0_18] : memref<8x1xf32, #tpu.memory_space<vmem>>, vector<8x1xf32>
    tpu.vector_store %arg8[%c0_17, %c0_18], %25 {strides = array<i32>} : memref<8x1xf32, #tpu.memory_space<vmem>>, vector<8x1xf32>,
    return
  }
  func.func @transform_0(%arg0: i32) -> (i32, i32) {
    %c0_i32 = arith.constant 0 : i32
    %c0_i32_0 = arith.constant 0 : i32
    return %arg0, %c0_i32 : i32, i32
  }
  func.func @transform_1(%arg0: i32) -> (i32, i32) {
    %c0_i32 = arith.constant 0 : i32
    %c0_i32_0 = arith.constant 0 : i32
    %c0_i32_1 = arith.constant 0 : i32
    return %c0_i32, %c0_i32_0 : i32, i32
  }
  func.func @transform_2(%arg0: i32) -> (i32, i32) {
    %c0_i32 = arith.constant 0 : i32
    %c0_i32_0 = arith.constant 0 : i32
    %c0_i32_1 = arith.constant 0 : i32
    return %c0_i32, %c0_i32_0 : i32, i32
  }
  func.func @transform_3(%arg0: i32) -> (i32, i32) {
    %c0_i32 = arith.constant 0 : i32
    %c0_i32_0 = arith.constant 0 : i32
    %c0_i32_1 = arith.constant 0 : i32
    return %c0_i32, %c0_i32_0 : i32, i32
  }
  func.func @transform_4(%arg0: i32) -> (i32, i32) {
    %c0_i32 = arith.constant 0 : i32
    %c0_i32_0 = arith.constant 0 : i32
    %c0_i32_1 = arith.constant 0 : i32
    return %c0_i32, %c0_i32_0 : i32, i32
  }
  func.func @transform_5(%arg0: i32) -> (i32, i32) {
    %c0_i32 = arith.constant 0 : i32
    %c0_i32_0 = arith.constant 0 : i32
    %c0_i32_1 = arith.constant 0 : i32
    return %c0_i32, %c0_i32_0 : i32, i32
  }
  func.func @transform_6(%arg0: i32) -> i32 {
    %c0_i32 = arith.constant 0 : i32
    %c0_i32_0 = arith.constant 0 : i32
    return %c0_i32 : i32
  }
  func.func @transform_7(%arg0: i32) -> (i32, i32) {
    %c0_i32 = arith.constant 0 : i32
    %c0_i32_0 = arith.constant 0 : i32
    return %arg0, %c0_i32 : i32, i32
  }
}

</mosaic_0001>

<bundles_post_ra>
// kernel: tpu_custom_call.1
= control target key start
LH: loop header
LB: loop body
LE: loop exit
PB: predicated region body
PF: predicated region fallthrough
CT: control target
= control target key end

     0   :  { %13 = vsyncpa [#allocation4], 0  ;;  %s418_s0 = inlined_call_operand.hbm [shape: bf16[8,32], index: 0, kind: input, shape index: {}]   ;;  %s419_s1 = inlined_call_operand.hbm [shape: bf16[32,128], index: 1, kind: input, shape index: {}]   ;;  %s420_s2 = inlined_call_operand.vmem [shape: f32[1,128], index: 2, kind: input, shape index: {}]   ;;  %s421_s3 = inlined_call_operand.hbm [shape: bf16[128,128], index: 3, kind: input, shape index: {}]   ;;  %s422_s4 = inlined_call_operand.vmem [shape: f32[1,128], index: 4, kind: input, shape index: {}]   ;;  %s423_s5 = inlined_call_operand.vmem [shape: f32[1,128], index: 5, kind: input, shape index: {}]   ;;  %s424_s6 = inlined_call_operand.<no memory space> [shape: f32[1], index: 6, kind: input, shape index: {}]   ;;  %s425_s7 = inlined_call_operand.vmem [shape: f32[8,1], index: 7, kind: output, shape index: {}]  }
   0x1   :  { %14 = vsyncpa [#allocation6], 0  ;;  %s30_s26 = sshll.u32 %s419_s1, 4  ;;  %s349_s27 = smov [#allocation5]   ;;  %s31_s26 = int_to_ptr.hbm [resolvable:$true] %s30_s26 }
   0x2   :  { %s32_s28 = sshll.u32 %s349_s27, 4  ;;  %s20_s8 = sshll.u32 %s418_s0, 4  ;;  %s33_s28 = int_to_ptr.vmem [resolvable:$true] %s32_s28  ;;  %s21_s8 = int_to_ptr.hbm [resolvable:$true] %s20_s8 }
   0x3   :  { %s350_s9 = smov 64   ;;  %s351_s10 = smov 4  }
   0x4   :  { %38 = dma.hbm_to_vmem [thread:$0]  %s31_s26, 256, %s33_s28, [#allocation6], %s350_s9, %s350_s9, %s351_s10  }
   0x5   :  { %s352_s11 = smov [#allocation3]   ;;  %s45_s15 = sshll.u32 %s421_s3, 4  ;;  %s46_s15 = int_to_ptr.hbm [resolvable:$true] %s45_s15 }
   0x6   :  { %s22_s12 = sshll.u32 %s352_s11, 4  ;;  %s353_s1 = smov [#allocation7]   ;;  %s23_s12 = int_to_ptr.vmem [resolvable:$true] %s22_s12 }
   0x7   :  { %25 = dma.hbm_to_vmem [thread:$0]  %s21_s8, 64, %s23_s12, [#allocation4]  }
   0x8   :  { %s47_s16 = sshll.u32 %s353_s1, 4  ;;  %s48_s16 = int_to_ptr.vmem [resolvable:$true] %s47_s16 }
   0x9   :  { %53 = dma.hbm_to_vmem [thread:$0]  %s46_s15, 1024, %s48_s16, [#allocation6], %s350_s9, %s350_s9, %s351_s10  }
   0xa   :  { %345 = dma.done.wait [#allocation4], 64  }
   0xb   :  { %346 = vsyncadd [#allocation4], 4294967232 }
   0xc   :  { %347 = dma.done.wait [#allocation6], 1280  }
   0xd   :  { %348 = vsyncadd [#allocation6], 4294966016  ;;  %v256_v0 = vld [vmem:[#allocation5 + $0x8] sm:$0xff]  ;;  %v255_v2 = vld [vmem:[#allocation5] sm:$0xff]  ;;  %vm94_vm0 = vcmask 261120   ;;  %v203_v24 = vstv %s424_s6  ;;  %vm206_vm1 = vcmask 7168  }
   0xe   :  { %v264_v1 = vld [vmem:[#allocation7 + $0x38] sm:$0xff]  ;;  %104 = vmatpush.bf16.msra.mxu0 %v256_v0  ;;  %v263_v3 = vld [vmem:[#allocation7 + $0x30] sm:$0xff]  ;;  %v73_v4 = vld [vmem:[#allocation3] sm:$0xf] }
   0xf   :  { %181 = vmatpush.bf16.msra.mxu1 %v264_v1  ;;  %v262_v5 = vld [vmem:[#allocation7 + $0x28] sm:$0xff]  ;;  %v261_v6 = vld [vmem:[#allocation7 + $0x20] sm:$0xff]  ;;  %v260_v7 = vld [vmem:[#allocation7 + $0x18] sm:$0xff] }
  0x10   :  { %v259_v8 = vld [vmem:[#allocation7 + $0x10] sm:$0xff]  ;;  %v258_v9 = vld [vmem:[#allocation7 + $0x8] sm:$0xff]  ;;  %v257_v10 = vld [vmem:[#allocation7] sm:$0xff] }
  0x11   :  { %v270_v11 = vld [vmem:[%s420_s2] ss:$0 sm:$0xff] }
  0x12   :  { %105 = vmatpush.bf16.msra.mxu0 %v255_v2  ;;  %v271_v17 = vld [vmem:[%s422_s4] ss:$0 sm:$0xff] }
  0x13   :  { %182 = vmatpush.bf16.msra.mxu1 %v263_v3  ;;  %v272_v20 = vld [vmem:[%s423_s5] ss:$0 sm:$0xff] }
  0x15   :  { %222 = vmatmul.msk.bf16.vlgmr.msra.gmra.mxu0 %vm94_vm0, %v73_v4 }
  0x17   :  { %183 = vmatpush.bf16.msra.mxu1 %v262_v5 }
  0x1b   :  { %184 = vmatpush.bf16.msra.mxu1 %v261_v6 }
  0x1f   :  { %185 = vmatpush.bf16.msra.mxu1 %v260_v7 }
  0x23   :  { %186 = vmatpush.bf16.msra.mxu1 %v259_v8 }
  0x27   :  { %187 = vmatpush.bf16.msra.mxu1 %v258_v9 }
  0x2b   :  { %188 = vmatpush.bf16.msra.mxu1 %v257_v10 }
  0x92   :  { %v107_v12 = vpop.f32.mrf.mxu0 }
  0x93   :  { %v108_v13 = vadd.f32 %v270_v11, %v107_v12 }
  0x95   :  { %v111_v14 = vmax.f32 %v108_v13, 0.0 }
  0x97   :  { %v112_v15 = vpack.c.bf16 %v111_v14, %v111_v14 }
  0x99   :  { %189 = vmatmul.bf16.vlgmr.msra.gmra.mxu1 %v112_v15 }
  0x9a   :  { %v109_v16 = vpop.f32.mrf.mxu0 }
 0x116   :  { %v190_v18 = vpop.f32.mrf.mxu1 }
 0x117   :  { %v191_v19 = vadd.f32 %v271_v17, %v190_v18 }
 0x119   :  { %v194_v21 = vmax.f32 %v191_v19, 0.0 }
 0x11b   :  { %v199_v22 = vmul.f32 %v272_v20, %v194_v21 }
 0x11d   :  { %200 = vadd.xlane.f32.xlu0 %v199_v22 }
 0x11e   :  { %v192_v23 = vpop.f32.mrf.mxu1 }
 0x190   :  { %v201_v25 = vpop.xlane.xlu0 %200 }
 0x191   :  { %v204_v26 = vadd.f32 %v203_v24, %v201_v25 }
 0x193   :  { %v205_v27 = vmax.f32 %v204_v26, 0.0 }
 0x195   :  { %207 = vst.msk [vmem:[%s425_s7] sm:$0xff] %vm206_vm1, %v205_v27 }
 0x196   :  { %212 = vsyncpa [#allocation4], 1 }
 0x197   :  { %213 = vsyncpa [#allocation6], 1 }

</bundles_post_ra>
